<compile_context>
chip_gen: v7x
topology: tpu7x:2x2x1
jax: 0.10.0
libtpu: 0.0.40
codegen_flags: <defaults>
</compile_context>

<pallas_src>
import functools

import jax
import jax.numpy as jnp
from jax import lax
from jax.experimental import pallas as pl
from jax.experimental.pallas import tpu as pltpu

# Scaled-down hyperparameters (reference: EMBED_SIZE=300, HIDDEN_SIZE=1000).
# Chosen so H_DIR and 4*H_DIR are 128-lane aligned.
EMBED_SIZE = 128
HIDDEN_SIZE = 256
NUM_DIRS = 2
NUM_LAYERS = 2
H_DIR = HIDDEN_SIZE // NUM_DIRS          # per-direction hidden size (128)
PAD_IDX = 0

_SUBLANE_PACK = 16                        # bf16 sublane packing granularity
_PROJ_ROW_TILE = 1024                     # row tile for the matmul kernels
_TIME_CHUNK = 32                          # timesteps per LSTM grid chunk
_VMEM_LIMIT_BYTES = 48 * 1024 * 1024      # explicit scoped-VMEM limit


# ---------------------------------------------------------------------------
# Pallas kernels
# ---------------------------------------------------------------------------
def _matmul_bf16_kernel(x_ref, w_ref, o_ref):
    """Plain row-tiled matmul, bf16 in / f32 acc / bf16 out (input proj)."""
    o_ref[...] = jnp.dot(x_ref[...], w_ref[...],
                         preferred_element_type=jnp.float32).astype(o_ref.dtype)


def _lstm_dir_chunk_kernel(xp_ref, m_ref, whh_ref, b_ref, o_ref,
                           h_sc, c_sc, *, TC, B):
    """One (direction, time-chunk) tile of a bidirectional LSTM layer.

    grid = (NUM_DIRS, NC); time axis is "arbitrary", state carried in scratch.

    xp_ref: (TC*B, 4H) bf16  precomputed x @ W_ih for this dir/chunk (streamed)
    m_ref:  (TC*B, 1)  f32   validity mask chunk (width 1)
    whh_ref:(H, 4H)    bf16  hidden->gates weight (pre-transposed)
    b_ref:  (1, 4H)    f32   b_ih + b_hh (folded into per-step gate add)
    o_ref:  (TC*B, H)  bf16  hidden outputs -> column half of (rows, 2H)
    h_sc:   (B, H)     bf16  recurrent hidden state (carried across chunks)
    c_sc:   (B, H)     f32   recurrent cell state   (carried across chunks)
    """
    H = c_sc.shape[1]
    d = pl.program_id(0)                   # 0 = forward, 1 = backward

    @pl.when(pl.program_id(1) == 0)        # first chunk of this direction
    def _():
        h_sc[...] = jnp.zeros_like(h_sc)
        c_sc[...] = jnp.zeros_like(c_sc)

    whh = whh_ref[...]                     # (H, 4H) bf16, loaded once
    bias = b_ref[...]                      # (1, 4H) f32

    def step(i, carry):
        # forward walks local t = i; backward walks t = TC-1-i (pure int math,
        # outputs stored at their true time row -> no reversal copies).
        t = i + d * (TC - 1 - 2 * i)
        r0 = pl.multiple_of(t * B, B)      # tile-aligned row offset (B % 16 == 0)

        h_prev = h_sc[...]                 # bf16 (feeds MXU directly)
        c_prev = c_sc[...]                 # f32

        # (B, 4H) f32: streamed x-part + bias + recurrent part (bf16 MXU, f32 acc)
        gates = (xp_ref[pl.ds(r0, B), :].astype(jnp.float32)
                 + bias
                 + jnp.dot(h_prev, whh, preferred_element_type=jnp.float32))

        # PyTorch gate order i, f, g, o; all slices are 128-lane aligned.
        i_g = jax.nn.sigmoid(gates[:, 0 * H:1 * H])
        f_g = jax.nn.sigmoid(gates[:, 1 * H:2 * H])
        g_g = jnp.tanh(gates[:, 2 * H:3 * H])
        o_g = jax.nn.sigmoid(gates[:, 3 * H:4 * H])

        c_new = f_g * c_prev + i_g * g_g
        h_new = o_g * jnp.tanh(c_new)

        # packed-sequence emulation: freeze state on padded timesteps
        keep = m_ref[pl.ds(r0, B), :] != 0.0          # (B, 1) bool
        h_new = jnp.where(keep, h_new.astype(jnp.bfloat16), h_prev)
        c_new = jnp.where(keep, c_new, c_prev)

        h_sc[...] = h_new
        c_sc[...] = c_new
        o_ref[pl.ds(r0, B), :] = h_new
        return carry

    lax.fori_loop(0, TC, step, 0, unroll=4)


def _proj_mask_kernel(h_ref, w_ref, b_ref, m_ref, o_ref):
    """Final Linear(HIDDEN -> padded num_tags) followed by mask (width-1)."""
    acc = (jnp.dot(h_ref[...], w_ref[...],
                   preferred_element_type=jnp.float32) + b_ref[...])
    o_ref[...] = jnp.where(m_ref[...] != 0.0, acc,
                           jnp.float32(0.0)).astype(o_ref.dtype)


# ---------------------------------------------------------------------------
# Wrappers
# ---------------------------------------------------------------------------
def _input_proj(x2, wih):
    """x2: (rows, Din) bf16; wih: (Din, 2*4H) bf16 -> (rows, 2*4H) bf16."""
    rows, din = x2.shape
    n_out = wih.shape[1]
    row_tile = rows if rows <= _PROJ_ROW_TILE else _PROJ_ROW_TILE

    return pl.pallas_call(
        _matmul_bf16_kernel,
        out_shape=jax.ShapeDtypeStruct((rows, n_out), jnp.bfloat16),
        grid=(pl.cdiv(rows, row_tile),),
        in_specs=[pl.BlockSpec((row_tile, din), lambda r: (r, 0)),
                  pl.BlockSpec((din, n_out), lambda r: (0, 0))],
        out_specs=pl.BlockSpec((row_tile, n_out), lambda r: (r, 0)),
        compiler_params=pltpu.CompilerParams(
            dimension_semantics=("parallel",),
            vmem_limit_bytes=_VMEM_LIMIT_BYTES),
    )(x2, wih)


def _bilstm_recurrence(xp, m2, lp, Tp, Bp, TC):
    """xp: (Tp*Bp, 2*4H) bf16 precomputed input projection (both directions).

    Returns (Tp*Bp, 2*H_DIR) bf16: [forward ‖ backward] hidden outputs, written
    directly into column halves (no concatenate).
    """
    H = H_DIR
    rows = Tp * Bp
    NC = Tp // TC
    kernel = functools.partial(_lstm_dir_chunk_kernel, TC=TC, B=Bp)

    # chunk index: forward visits c, backward visits NC-1-c (reverse order)
    return pl.pallas_call(
        kernel,
        out_shape=jax.ShapeDtypeStruct((rows, NUM_DIRS * H), jnp.bfloat16),
        grid=(NUM_DIRS, NC),
        in_specs=[
            pl.BlockSpec((TC * Bp, 4 * H),
                         lambda d, c: (c + d * (NC - 1 - 2 * c), d)),
            pl.BlockSpec((TC * Bp, 1),
                         lambda d, c: (c + d * (NC - 1 - 2 * c), 0)),
            pl.BlockSpec((None, H, 4 * H), lambda d, c: (d, 0, 0)),
            pl.BlockSpec((None, 1, 4 * H), lambda d, c: (d, 0, 0)),
        ],
        out_specs=pl.BlockSpec((TC * Bp, H),
                               lambda d, c: (c + d * (NC - 1 - 2 * c), d)),
        scratch_shapes=[pltpu.VMEM((Bp, H), jnp.bfloat16),   # h (bf16: MXU-ready)
                        pltpu.VMEM((Bp, H), jnp.float32)],   # c (f32)
        compiler_params=pltpu.CompilerParams(
            dimension_semantics=("parallel", "arbitrary"),
            vmem_limit_bytes=_VMEM_LIMIT_BYTES),
    )(xp, m2, lp['whh'], lp['b'])


def _project(h2, w_t, b, m2):
    """h2: (rows, HIDDEN) bf16 -> (rows, tags_pad) bf16, masked."""
    rows, hidden = h2.shape
    tags_pad = w_t.shape[1]
    row_tile = rows if rows <= _PROJ_ROW_TILE else _PROJ_ROW_TILE

    return pl.pallas_call(
        _proj_mask_kernel,
        out_shape=jax.ShapeDtypeStruct((rows, tags_pad), jnp.bfloat16),
        grid=(pl.cdiv(rows, row_tile),),
        in_specs=[pl.BlockSpec((row_tile, hidden), lambda r: (r, 0)),
                  pl.BlockSpec((hidden, tags_pad), lambda r: (0, 0)),
                  pl.BlockSpec((1, tags_pad), lambda r: (0, 0)),
                  pl.BlockSpec((row_tile, 1), lambda r: (r, 0))],
        out_specs=pl.BlockSpec((row_tile, tags_pad), lambda r: (r, 0)),
        compiler_params=pltpu.CompilerParams(
            dimension_semantics=("parallel",),
            vmem_limit_bytes=_VMEM_LIMIT_BYTES),
    )(h2, w_t, b, m2)


def init_params(key, wti_size, num_tags):
    ks = jax.random.split(key, 32)
    bound = 1.0 / (H_DIR ** 0.5)

    def u(kk, shape):
        return jax.random.uniform(kk, shape, jnp.float32, -bound, bound)

    emb = jax.random.normal(ks[0], (wti_size, EMBED_SIZE), jnp.float32) * 0.1
    emb = emb.at[PAD_IDX].set(0.0)                      # padding_idx=0

    layers = []
    idx = 1
    din = EMBED_SIZE
    for _ in range(NUM_LAYERS):
        wih_cols, whhs, bs = [], [], []
        for _ in range(NUM_DIRS):
            wih = u(ks[idx], (4 * H_DIR, din)); idx += 1
            whh = u(ks[idx], (4 * H_DIR, H_DIR)); idx += 1
            b_ih = u(ks[idx], (4 * H_DIR,)); idx += 1
            b_hh = u(ks[idx], (4 * H_DIR,)); idx += 1
            wih_cols.append(wih.T)                      # (din, 4H)
            whhs.append(whh.T)                          # (H, 4H)
            bs.append((b_ih + b_hh)[None, :])           # (1, 4H)
        layers.append({
            # both directions fused column-wise: one big input-proj matmul
            'wih': jnp.concatenate(wih_cols, axis=1).astype(jnp.bfloat16),  # (din, 2*4H)
            'whh': jnp.stack(whhs).astype(jnp.bfloat16),                    # (2, H, 4H)
            'b': jnp.stack(bs),                                             # (2, 1, 4H) f32
        })
        din = HIDDEN_SIZE

    w_out = u(ks[idx], (num_tags, HIDDEN_SIZE)); idx += 1
    b_out = u(ks[idx], (num_tags,))

    # pad num_tags up to 128 lanes for lane-dense projection stores
    tags_pad = max(128, ((num_tags + 127) // 128) * 128)
    w_out_t = jnp.zeros((HIDDEN_SIZE, tags_pad), jnp.float32)
    w_out_t = w_out_t.at[:, :num_tags].set(w_out.T)
    b_out_p = jnp.zeros((1, tags_pad), jnp.float32).at[:, :num_tags].set(b_out)

    return {'emb': emb, 'layers': layers,
            'w_out_t': w_out_t.astype(jnp.bfloat16), 'b_out': b_out_p,
            'num_tags': num_tags}


def rnn_forward(params, xc, xw, mask):
    """Forward pass matching rnn.forward(xc, xw, mask).

    xc: (B, T, L) int32 (unused: only 'lookup' embedding is configured)
    xw: (B, T)    int32 word ids
    mask: (B, T)  float {0,1}, padding at end of each row
    returns: (B, T, num_tags) float32
    """
    del xc
    B, T = xw.shape
    num_tags = params['num_tags']

    # pad batch to a multiple of 16 so in-kernel dynamic sublane slices are
    # bf16 tile-aligned; pad time to a multiple of the chunk size (mask=0 there)
    Bp = ((max(B, _SUBLANE_PACK) + _SUBLANE_PACK - 1)
          // _SUBLANE_PACK) * _SUBLANE_PACK
    TC = min(T, _TIME_CHUNK)
    Tp = ((T + TC - 1) // TC) * TC

    mask_f = mask.astype(jnp.float32)

    # time-major embedding gather (no (B,T,E) transpose of the activation)
    h = params['emb'][xw.T]                              # (T, B, E) glue gather
    h = jnp.pad(h, ((0, Tp - T), (0, Bp - B), (0, 0)))
    x2 = h.reshape(Tp * Bp, EMBED_SIZE).astype(jnp.bfloat16)   # row r = t*Bp + b
    m2 = jnp.pad(mask_f.T, ((0, Tp - T), (0, Bp - B))).reshape(Tp * Bp, 1)

    for lp in params['layers']:
        xp = _input_proj(x2, lp['wih'])                  # (rows, 2*4H) bf16 in HBM
        x2 = _bilstm_recurrence(xp, m2, lp, Tp, Bp, TC)  # (rows, HIDDEN) bf16

    out = _project(x2, params['w_out_t'], params['b_out'], m2)  # (rows, pad) bf16

    out = out[:, :num_tags].astype(jnp.float32)
    out = out.reshape(Tp, Bp, num_tags)[:T, :B]
    return jnp.transpose(out, (1, 0, 2))                 # (B, T, num_tags)


# ---------------------------------------------------------------------------
if __name__ == "__main__":
    key = jax.random.PRNGKey(0)
    k_p, k_w, k_c = jax.random.split(key, 3)

    B, T, L = 2, 8, 4
    cti_size, wti_size, num_tags = 8, 16, 8

    params = init_params(k_p, wti_size, num_tags)

    xw = jax.random.randint(k_w, (B, T), 1, wti_size, dtype=jnp.int32)
    xc = jax.random.randint(k_c, (B, T, L), 1, cti_size, dtype=jnp.int32)
    lengths = jnp.array([8, 5], dtype=jnp.int32)        # sorted decreasing
    mask = (jnp.arange(T)[None, :] < lengths[:, None]).astype(jnp.float32)
    xw = jnp.where(mask.astype(bool), xw, PAD_IDX)

    out = rnn_forward(params, xc, xw, mask)
    jax.block_until_ready(out)
    assert out.shape == (B, T, num_tags)
    print("KERNEL_OK")
</pallas_src>

<mosaic_0001>
module attributes {stable_mosaic.version = 11 : i64} {
  func.func @_matmul_bf16_kernel(%arg0: i32, %arg1: memref<128x128xbf16, #tpu.memory_space<vmem>>, %arg2: memref<128x1024xbf16, #tpu.memory_space<vmem>>, %arg3: memref<128x1024xbf16, #tpu.memory_space<vmem>>) attributes {dimension_semantics = [#tpu.dimension_semantics<parallel>], iteration_bounds = array<i64: 1>, scalar_prefetch = 0 : i64, scratch_operands = 0 : i64, tpu.core_type = #tpu.core_type<tc>, window_params = [{transform_indices = @transform_0, window_bounds = array<i64: 128, 128>}, {pipeline_mode = #tpu.pipeline_mode<synchronous>, transform_indices = @transform_1, window_bounds = array<i64: 128, 1024>}, {transform_indices = @transform_2, window_bounds = array<i64: 128, 1024>}]} {
    %c0 = arith.constant 0 : index
    %c0_0 = arith.constant 0 : index
    %0 = vector.load %arg1[%c0, %c0_0] : memref<128x128xbf16, #tpu.memory_space<vmem>>, vector<128x128xbf16>
    %c0_1 = arith.constant 0 : index
    %c0_2 = arith.constant 0 : index
    %1 = vector.load %arg2[%c0_1, %c0_2] : memref<128x1024xbf16, #tpu.memory_space<vmem>>, vector<128x1024xbf16>
    %cst = arith.constant dense<0.000000e+00> : vector<128x1024xf32>
    %2 = tpu.matmul %0, %1, %cst {dimension_numbers = #tpu.dot_dimension_numbers<[1], [0], [0], [1], [0, 0, 1, 1], [], []>} : vector<128x128xbf16>, vector<128x1024xbf16>, vector<128x1024xf32> -> vector<128x1024xf32>
    %3 = arith.truncf %2 : vector<128x1024xf32> to vector<128x1024xbf16>
    %c0_3 = arith.constant 0 : index
    %c0_4 = arith.constant 0 : index
    %4 = vector.load %arg3[%c0_3, %c0_4] : memref<128x1024xbf16, #tpu.memory_space<vmem>>, vector<128x1024xbf16>
    tpu.vector_store %arg3[%c0_3, %c0_4], %3 {strides = array<i32>} : memref<128x1024xbf16, #tpu.memory_space<vmem>>, vector<128x1024xbf16>,
    return
  }
  func.func @transform_0(%arg0: i32) -> (i32, i32) {
    %c0_i32 = arith.constant 0 : i32
    %c0_i32_0 = arith.constant 0 : i32
    return %arg0, %c0_i32 : i32, i32
  }
  func.func @transform_1(%arg0: i32) -> (i32, i32) {
    %c0_i32 = arith.constant 0 : i32
    %c0_i32_0 = arith.constant 0 : i32
    %c0_i32_1 = arith.constant 0 : i32
    return %c0_i32, %c0_i32_0 : i32, i32
  }
  func.func @transform_2(%arg0: i32) -> (i32, i32) {
    %c0_i32 = arith.constant 0 : i32
    %c0_i32_0 = arith.constant 0 : i32
    return %arg0, %c0_i32 : i32, i32
  }
}

</mosaic_0001>

<bundles_post_ra>
// kernel: tpu_custom_call.1
= control target key start
LH: loop header
LB: loop body
LE: loop exit
PB: predicated region body
PF: predicated region fallthrough
CT: control target
= control target key end

     0   :  { %7 = vsyncpa [#allocation3], 0  ;;  %s1810_s0 = inlined_call_operand.hbm [shape: bf16[128,128], index: 0, kind: input, shape index: {}]   ;;  %s1811_s1 = inlined_call_operand.hbm [shape: bf16[128,1024], index: 1, kind: input, shape index: {}]   ;;  %s1812_s2 = inlined_call_operand.hbm [shape: bf16[128,1024], index: 2, kind: output, shape index: {}]  }
   0x1   :  { %8 = vsyncpa [#allocation6], 0 }
   0x2   :  { %9 = vsyncpa [#allocation4], 0  ;;  %s1695_s9 = smov [#allocation2]   ;;  %s1623_s13 = scalar_lea.hbm %s1810_s0, 1024 }
   0x3   :  { %s15_s10 = sshll.u32 %s1695_s9, 4  ;;  %p1624_p0 = scmp.ne.s32.totalorder %s1810_s0, %s1623_s13  ;;  %s16_s10 = int_to_ptr.vmem [resolvable:$true] %s15_s10 }
   0x4   :  { %p1627_p1 = scmp.lt.u32.totalorder %s1623_s13, %s1810_s0 }
   0x6   :  { %p1629_p2 = pnand %p1627_p1, %p1624_p0 }
   0x8   :  { %1632 = shalt.err (!%p1629_p2)
}
   0x9   :  { %s1633_s18 = scalar_lea.vmem %s16_s10, 1024  ;;  %p1638_p4 = scmp.lt.s32.totalorder %s16_s10, %s16_s10 }
   0xa   :  { %p1634_p3 = scmp.ne.s32.totalorder %s16_s10, %s1633_s18  ;;  %p1639_p5 = scmp.lt.s32.totalorder %s1633_s18, %s1633_s18 }
   0xc   :  { %p1640_p6 = por %p1639_p5, %p1638_p4 }
   0xe   :  { %p1641_p7 = pnand %p1640_p6, %p1634_p3 }
  0x10   :  { %1644 = shalt.err (!%p1641_p7)
}
  0x11   :  { %s1696_s19 = smov 64   ;;  %s1697_s20 = smov 4  }
  0x12   :  { %21 = dma.hbm_to_vmem [thread:$0]  %s1810_s0, 1024, %s16_s10, [#allocation3], %s1696_s19, %s1696_s19, %s1697_s20  }
  0x13   :  { %s1698_s23 = smov [#allocation5]   ;;  %s1645_s27 = scalar_lea.hbm %s1811_s1, 8192 }
  0x14   :  { %s27_s24 = sshll.u32 %s1698_s23, 4  ;;  %p1646_p8 = scmp.ne.s32.totalorder %s1811_s1, %s1645_s27  ;;  %s28_s24 = int_to_ptr.vmem [resolvable:$true] %s27_s24 }
  0x15   :  { %p1649_p9 = scmp.lt.u32.totalorder %s1645_s27, %s1811_s1 }
  0x17   :  { %p1651_p10 = pnand %p1649_p9, %p1646_p8 }
  0x19   :  { %1654 = shalt.err (!%p1651_p10)
}
  0x1a   :  { %s1655_s4 = scalar_lea.vmem %s28_s24, 8192  ;;  %p1660_p12 = scmp.lt.s32.totalorder %s28_s24, %s28_s24 }
  0x1b   :  { %p1656_p11 = scmp.ne.s32.totalorder %s28_s24, %s1655_s4  ;;  %p1661_p13 = scmp.lt.s32.totalorder %s1655_s4, %s1655_s4 }
  0x1d   :  { %p1662_p0 = por %p1661_p13, %p1660_p12 }
  0x1f   :  { %p1663_p1 = pnand %p1662_p0, %p1656_p11 }
  0x21   :  { %1666 = shalt.err (!%p1663_p1)
}
  0x22   :  { %s1699_s0 = smov 512   ;;  %s1700_s5 = smov 32  }
  0x23   :  { %33 = dma.hbm_to_vmem [thread:$0]  %s1811_s1, 8192, %s28_s24, [#allocation6], %s1699_s0, %s1699_s0, %s1700_s5  }
  0x24   :  { %1689 = dma.done.wait [#allocation3], 1024  }
  0x25   :  { %1690 = vsyncadd [#allocation3], 4294966272 }
  0x26   :  { %1691 = dma.done.wait [#allocation6], 8192  }
  0x27   :  { %1692 = vsyncadd [#allocation6], 4294959104  ;;  %v1701_v0 = vmov 0   ;;  %v57_v1 = vld [vmem:[#allocation5] sm:$0xff]  ;;  %v58_v3 = vld [vmem:[#allocation5 + $0x8] sm:$0xff]  ;;  %s1702_s1 = smov [#allocation7]  }
  0x28   :  { %521 = vmatprep.mubr.bf16.mxu0 %v1701_v0  ;;  %634 = vmatprep.mubr.bf16.mxu1 %v1701_v0  ;;  %v61_v2 = vld [vmem:[#allocation5 + $0x20] sm:$0xff]  ;;  %v62_v5 = vld [vmem:[#allocation5 + $0x28] sm:$0xff]  ;;  %v59_v63 = vld [vmem:[#allocation5 + $0x10] sm:$0xff]  ;;  %s1394_s8 = sshll.u32 %s1702_s1, 4  ;;  %s1395_s8 = int_to_ptr.vmem [resolvable:$true] %s1394_s8 }
  0x29   :  { %v1416_v4 = vcombine.high %v57_v1, %v61_v2  ;;  %v1415_v6 = vcombine.low %v57_v1, %v61_v2  ;;  %v65_v7 = vld [vmem:[#allocation5 + $0x40] sm:$0xff]  ;;  %v1418_v9 = vcombine.high %v58_v3, %v62_v5  ;;  %v1417_v10 = vcombine.low %v58_v3, %v62_v5  ;;  %v66_v12 = vld [vmem:[#allocation5 + $0x48] sm:$0xff]  ;;  %v63_v1 = vld [vmem:[#allocation5 + $0x30] sm:$0xff]  ;;  %s1667_s9 = scalar_lea.vmem %s1395_s8, 8192  ;;  %p1672_p3 = scmp.lt.s32.totalorder %s1395_s8, %s1395_s8 }
  0x2a   :  { %v69_v8 = vld [vmem:[#allocation5 + $0x60] sm:$0xff]  ;;  %v70_v13 = vld [vmem:[#allocation5 + $0x68] sm:$0xff]  ;;  %v60_v2 = vld [vmem:[#allocation5 + $0x18] sm:$0xff]  ;;  %p1668_p2 = scmp.ne.s32.totalorder %s1395_s8, %s1667_s9  ;;  %p1673_p4 = scmp.lt.s32.totalorder %s1667_s9, %s1667_s9 }
  0x2b   :  { %v1424_v11 = vcombine.high %v65_v7, %v69_v8  ;;  %v73_v14 = vld [vmem:[#allocation5 + $0x80] sm:$0xff]  ;;  %489 = vmatprep.subr.bf16.mxu0 %v1416_v4  ;;  %v1426_v15 = vcombine.high %v66_v12, %v70_v13  ;;  %v74_v17 = vld [vmem:[#allocation5 + $0x88] sm:$0xff]  ;;  %602 = vmatprep.subr.bf16.mxu1 %v1418_v9  ;;  %v1423_v19 = vcombine.low %v65_v7, %v69_v8  ;;  %v64_v3 = vld [vmem:[#allocation5 + $0x38] sm:$0xff] }
  0x2c   :  { %v77_v16 = vld [vmem:[#allocation5 + $0xa0] sm:$0xff]  ;;  %v78_v18 = vld [vmem:[#allocation5 + $0xa8] sm:$0xff]  ;;  %490 = vmatpush1.bf16.msra.mxu0 %v1415_v6  ;;  %603 = vmatpush1.bf16.msra.mxu1 %v1417_v10  ;;  %v1425_v20 = vcombine.low %v66_v12, %v70_v13  ;;  %v1420_v6 = vcombine.high %v59_v63, %v63_v1  ;;  %v1422_v7 = vcombine.high %v60_v2, %v64_v3  ;;  %v67_v9 = vld [vmem:[#allocation5 + $0x50] sm:$0xff]  ;;  %p1674_p5 = por %p1673_p4, %p1672_p3 }
  0x2d   :  { %491 = vmatprep.subr.bf16.mxu0 %v1424_v11  ;;  %v1432_v21 = vcombine.high %v73_v14, %v77_v16  ;;  %604 = vmatprep.subr.bf16.mxu1 %v1426_v15  ;;  %v1434_v22 = vcombine.high %v74_v17, %v78_v18  ;;  %v81_v23 = vld [vmem:[#allocation5 + $0xc0] sm:$0xff]  ;;  %v82_v25 = vld [vmem:[#allocation5 + $0xc8] sm:$0xff]  ;;  %v1431_v27 = vcombine.low %v73_v14, %v77_v16  ;;  %v71_v10 = vld [vmem:[#allocation5 + $0x70] sm:$0xff] }
  0x2e   :  { %v85_v24 = vld [vmem:[#allocation5 + $0xe0] sm:$0xff]  ;;  %v86_v26 = vld [vmem:[#allocation5 + $0xe8] sm:$0xff]  ;;  %v1433_v28 = vcombine.low %v74_v17, %v78_v18  ;;  %v1419_v11 = vcombine.low %v59_v63, %v63_v1  ;;  %v68_v12 = vld [vmem:[#allocation5 + $0x58] sm:$0xff]  ;;  %v1421_v14 = vcombine.low %v60_v2, %v64_v3  ;;  %v1428_v15 = vcombine.high %v67_v9, %v71_v10  ;;  %p1675_p6 = pnand %p1674_p5, %p1668_p2 }
  0x2f   :  { %v1440_v29 = vcombine.high %v81_v23, %v85_v24  ;;  %v1442_v30 = vcombine.high %v82_v25, %v86_v26  ;;  %v89_v31 = vld [vmem:[#allocation5 + $0x100] sm:$0xff]  ;;  %v90_v33 = vld [vmem:[#allocation5 + $0x108] sm:$0xff]  ;;  %v1439_v35 = vcombine.low %v81_v23, %v85_v24  ;;  %v1441_v36 = vcombine.low %v82_v25, %v86_v26  ;;  %v72_v13 = vld [vmem:[#allocation5 + $0x78] sm:$0xff] }
  0x30   :  { %492 = vmatpush1.bf16.msra.mxu0 %v1423_v19  ;;  %605 = vmatpush1.bf16.msra.mxu1 %v1425_v20  ;;  %v93_v32 = vld [vmem:[#allocation5 + $0x120] sm:$0xff]  ;;  %v94_v34 = vld [vmem:[#allocation5 + $0x128] sm:$0xff]  ;;  %v75_v16 = vld [vmem:[#allocation5 + $0x90] sm:$0xff]  ;;  %v1430_v18 = vcombine.high %v68_v12, %v72_v13 }
  0x31   :  { %493 = vmatprep.subr.bf16.mxu0 %v1432_v21  ;;  %606 = vmatprep.subr.bf16.mxu1 %v1434_v22  ;;  %v1448_v37 = vcombine.high %v89_v31, %v93_v32  ;;  %v1450_v38 = vcombine.high %v90_v33, %v94_v34  ;;  %v97_v39 = vld [vmem:[#allocation5 + $0x140] sm:$0xff]  ;;  %v98_v41 = vld [vmem:[#allocation5 + $0x148] sm:$0xff]  ;;  %v1447_v43 = vcombine.low %v89_v31, %v93_v32  ;;  %v79_v17 = vld [vmem:[#allocation5 + $0xb0] sm:$0xff] }
  0x32   :  { %v101_v40 = vld [vmem:[#allocation5 + $0x160] sm:$0xff]  ;;  %v102_v42 = vld [vmem:[#allocation5 + $0x168] sm:$0xff]  ;;  %v1449_v44 = vcombine.low %v90_v33, %v94_v34  ;;  %v76_v19 = vld [vmem:[#allocation5 + $0x98] sm:$0xff]  ;;  %v1427_v21 = vcombine.low %v67_v9, %v71_v10  ;;  %v1429_v22 = vcombine.low %v68_v12, %v72_v13  ;;  %v1436_v23 = vcombine.high %v75_v16, %v79_v17 }
  0x33   :  { %v1456_v45 = vcombine.high %v97_v39, %v101_v40  ;;  %v1458_v46 = vcombine.high %v98_v41, %v102_v42  ;;  %v105_v47 = vld [vmem:[#allocation5 + $0x180] sm:$0xff]  ;;  %v106_v49 = vld [vmem:[#allocation5 + $0x188] sm:$0xff]  ;;  %v1455_v51 = vcombine.low %v97_v39, %v101_v40  ;;  %v1457_v52 = vcombine.low %v98_v41, %v102_v42  ;;  %v80_v20 = vld [vmem:[#allocation5 + $0xb8] sm:$0xff] }
  0x34   :  { %494 = vmatpush1.bf16.msra.mxu0 %v1431_v27  ;;  %607 = vmatpush1.bf16.msra.mxu1 %v1433_v28  ;;  %v109_v48 = vld [vmem:[#allocation5 + $0x1a0] sm:$0xff]  ;;  %v110_v50 = vld [vmem:[#allocation5 + $0x1a8] sm:$0xff]  ;;  %v1438_v24 = vcombine.high %v76_v19, %v80_v20  ;;  %v83_v26 = vld [vmem:[#allocation5 + $0xd0] sm:$0xff]  ;;  %v1437_v31 = vcombine.low %v76_v19, %v80_v20 }
  0x35   :  { %495 = vmatprep.subr.bf16.mxu0 %v1440_v29  ;;  %608 = vmatprep.subr.bf16.mxu1 %v1442_v30  ;;  %v1464_v53 = vcombine.high %v105_v47, %v109_v48  ;;  %v113_v54 = vld [vmem:[#allocation5 + $0x1c0] sm:$0xff]  ;;  %v1466_v55 = vcombine.high %v106_v49, %v110_v50  ;;  %v114_v57 = vld [vmem:[#allocation5 + $0x1c8] sm:$0xff]  ;;  %v1463_v59 = vcombine.low %v105_v47, %v109_v48  ;;  %v87_v27 = vld [vmem:[#allocation5 + $0xf0] sm:$0xff] }
  0x36   :  { %v117_v56 = vld [vmem:[#allocation5 + $0x1e0] sm:$0xff]  ;;  %v118_v58 = vld [vmem:[#allocation5 + $0x1e8] sm:$0xff]  ;;  %v1465_v60 = vcombine.low %v106_v49, %v110_v50  ;;  %v84_v28 = vld [vmem:[#allocation5 + $0xd8] sm:$0xff]  ;;  %v1435_v30 = vcombine.low %v75_v16, %v79_v17  ;;  %v1444_v32 = vcombine.high %v83_v26, %v87_v27 }
  0x37   :  { %v1472_v61 = vcombine.high %v113_v54, %v117_v56  ;;  %v1474_v62 = vcombine.high %v114_v57, %v118_v58  ;;  %v1471_v4 = vcombine.low %v113_v54, %v117_v56  ;;  %v1473_v5 = vcombine.low %v114_v57, %v118_v58  ;;  %v1747_v8 = vld [vmem:[#allocation2] sm:$0xff]   ;;  %v1753_v25 = vld [vmem:[#allocation2 + $0x8] sm:$0xff]   ;;  %v88_v29 = vld [vmem:[#allocation5 + $0xf8] sm:$0xff] }
  0x38   :  { %496 = vmatpush1.bf16.msra.mxu0 %v1439_v35  ;;  %609 = vmatpush1.bf16.msra.mxu1 %v1441_v36  ;;  %v1446_v33 = vcombine.high %v84_v28, %v88_v29  ;;  %v91_v34 = vld [vmem:[#allocation5 + $0x110] sm:$0xff]  ;;  %v92_v36 = vld [vmem:[#allocation5 + $0x118] sm:$0xff]  ;;  %v1445_v39 = vcombine.low %v84_v28, %v88_v29  ;;  %v1620_v9 = vld [vmem:[#allocation2 + $0x28] sm:$0xff]  }
  0x39   :  { %497 = vmatprep.subr.bf16.mxu0 %v1448_v37  ;;  %610 = vmatprep.subr.bf16.mxu1 %v1450_v38  ;;  %v95_v35 = vld [vmem:[#allocation5 + $0x130] sm:$0xff]  ;;  %v96_v37 = vld [vmem:[#allocation5 + $0x138] sm:$0xff]  ;;  %v1443_v38 = vcombine.low %v83_v26, %v87_v27 }
  0x3a   :  { %v1452_v40 = vcombine.high %v91_v34, %v95_v35  ;;  %v1759_v41 = vld [vmem:[#allocation2 + $0x10] sm:$0xff]   ;;  %v1454_v42 = vcombine.high %v92_v36, %v96_v37  ;;  %v1451_v47 = vcombine.low %v91_v34, %v95_v35  ;;  %v1453_v48 = vcombine.low %v92_v36, %v96_v37  ;;  %v112_v54 = vld [vmem:[#allocation5 + $0x1b8] sm:$0xff] }
  0x3b   :  { %v1618_v58 = vld [vmem:[#allocation2 + $0x18] sm:$0xff]   ;;  %v1621_v10 = vld [vmem:[#allocation2 + $0x30] sm:$0xff]  }
  0x3c   :  { %498 = vmatpush1.bf16.msra.mxu0 %v1447_v43  ;;  %611 = vmatpush1.bf16.msra.mxu1 %v1449_v44  ;;  %v99_v43 = vld [vmem:[#allocation5 + $0x150] sm:$0xff]  ;;  %v120_v63 = vld [vmem:[#allocation5 + $0x1f8] sm:$0xff] }
  0x3d   :  { %499 = vmatprep.subr.bf16.mxu0 %v1456_v45  ;;  %612 = vmatprep.subr.bf16.mxu1 %v1458_v46  ;;  %v103_v44 = vld [vmem:[#allocation5 + $0x170] sm:$0xff]  ;;  %v100_v45 = vld [vmem:[#allocation5 + $0x158] sm:$0xff] }
  0x3e   :  { %v104_v46 = vld [vmem:[#allocation5 + $0x178] sm:$0xff]  ;;  %v1460_v49 = vcombine.high %v99_v43, %v103_v44 }
  0x3f   :  { %v1462_v50 = vcombine.high %v100_v45, %v104_v46  ;;  %v1461_v56 = vcombine.low %v100_v45, %v104_v46 }
  0x40   :  { %500 = vmatpush1.bf16.msra.mxu0 %v1455_v51  ;;  %613 = vmatpush1.bf16.msra.mxu1 %v1457_v52  ;;  %v107_v51 = vld [vmem:[#allocation5 + $0x190] sm:$0xff] }
  0x41   :  { %501 = vmatprep.subr.bf16.mxu0 %v1464_v53  ;;  %614 = vmatprep.subr.bf16.mxu1 %v1466_v55  ;;  %v111_v52 = vld [vmem:[#allocation5 + $0x1b0] sm:$0xff]  ;;  %v108_v53 = vld [vmem:[#allocation5 + $0x198] sm:$0xff]  ;;  %v1459_v55 = vcombine.low %v99_v43, %v103_v44 }
  0x42   :  { %v1468_v57 = vcombine.high %v107_v51, %v111_v52  ;;  %v1467_v1 = vcombine.low %v107_v51, %v111_v52  ;;  %v1469_v2 = vcombine.low %v108_v53, %v112_v54 }
  0x44   :  { %502 = vmatpush1.bf16.msra.mxu0 %v1463_v59  ;;  %615 = vmatpush1.bf16.msra.mxu1 %v1465_v60  ;;  %v1470_v59 = vcombine.high %v108_v53, %v112_v54  ;;  %v115_v60 = vld [vmem:[#allocation5 + $0x1d0] sm:$0xff] }
  0x45   :  { %503 = vmatprep.subr.bf16.mxu0 %v1472_v61  ;;  %616 = vmatprep.subr.bf16.mxu1 %v1474_v62  ;;  %v119_v61 = vld [vmem:[#allocation5 + $0x1f0] sm:$0xff]  ;;  %v116_v62 = vld [vmem:[#allocation5 + $0x1d8] sm:$0xff] }
  0x46   :  { %v1476_v3 = vcombine.high %v115_v60, %v119_v61 }
  0x48   :  { %504 = vmatpush1.bf16.msra.mxu0 %v1471_v4  ;;  %617 = vmatpush1.bf16.msra.mxu1 %v1473_v5  ;;  %v1478_v4 = vcombine.high %v116_v62, %v120_v63  ;;  %v1475_v5 = vcombine.low %v115_v60, %v119_v61 }
  0x49   :  { %715 = vmatprep.subr.bf16.mxu0 %v1420_v6  ;;  %828 = vmatprep.subr.bf16.mxu1 %v1422_v7  ;;  %v1477_v6 = vcombine.low %v116_v62, %v120_v63  ;;  %v1619_v7 = vld [vmem:[#allocation2 + $0x20] sm:$0xff]  }
  0x4b   :  { %522 = vmatmul.mubr.bf16.vlgmr.msra.gmra.mrb[0].mxu0 %v1747_v8  ;;  %635 = vmatmul.mubr.bf16.vlgmr.msra.gmra.mrb[0].mxu1 %v1747_v8 }
  0x4c   :  { %716 = vmatpush1.bf16.msra.mxu0 %v1419_v11  ;;  %829 = vmatpush1.bf16.msra.mxu1 %v1421_v14  ;;  %v1622_v11 = vld [vmem:[#allocation2 + $0x38] sm:$0xff]  }
  0x4d   :  { %531 = vmatprep.mubr.bf16.mxu0 %v1701_v0  ;;  %644 = vmatprep.mubr.bf16.mxu1 %v1701_v0 }
  0x4e   :  { %717 = vmatprep.subr.bf16.mxu0 %v1428_v15  ;;  %830 = vmatprep.subr.bf16.mxu1 %v1430_v18 }
  0x50   :  { %718 = vmatpush1.bf16.msra.mxu0 %v1427_v21  ;;  %831 = vmatpush1.bf16.msra.mxu1 %v1429_v22 }
  0x51   :  { %719 = vmatprep.subr.bf16.mxu0 %v1436_v23  ;;  %832 = vmatprep.subr.bf16.mxu1 %v1438_v24 }
  0x53   :  { %532 = vmatmul.mubr.bf16.gmra.mrb[4].mxu0 %v1753_v25  ;;  %645 = vmatmul.mubr.bf16.gmra.mrb[4].mxu1 %v1753_v25 }
  0x54   :  { %541 = vmatprep.mubr.bf16.mxu0 %v1701_v0  ;;  %654 = vmatprep.mubr.bf16.mxu1 %v1701_v0 }
  0x55   :  { %720 = vmatpush1.bf16.msra.mxu0 %v1435_v30  ;;  %833 = vmatpush1.bf16.msra.mxu1 %v1437_v31 }
  0x56   :  { %721 = vmatprep.subr.bf16.mxu0 %v1444_v32  ;;  %834 = vmatprep.subr.bf16.mxu1 %v1446_v33 }
  0x59   :  { %722 = vmatpush1.bf16.msra.mxu0 %v1443_v38  ;;  %835 = vmatpush1.bf16.msra.mxu1 %v1445_v39 }
  0x5a   :  { %723 = vmatprep.subr.bf16.mxu0 %v1452_v40  ;;  %836 = vmatprep.subr.bf16.mxu1 %v1454_v42 }
  0x5b   :  { %542 = vmatmul.mubr.bf16.gmra.mrb[8].mxu0 %v1759_v41  ;;  %655 = vmatmul.mubr.bf16.gmra.mrb[8].mxu1 %v1759_v41 }
  0x5c   :  { %551 = vmatprep.mubr.bf16.mxu0 %v1701_v0  ;;  %664 = vmatprep.mubr.bf16.mxu1 %v1701_v0 }
  0x5d   :  { %724 = vmatpush1.bf16.msra.mxu0 %v1451_v47  ;;  %837 = vmatpush1.bf16.msra.mxu1 %v1453_v48 }
  0x5e   :  { %725 = vmatprep.subr.bf16.mxu0 %v1460_v49  ;;  %838 = vmatprep.subr.bf16.mxu1 %v1462_v50 }
  0x61   :  { %726 = vmatpush1.bf16.msra.mxu0 %v1459_v55  ;;  %839 = vmatpush1.bf16.msra.mxu1 %v1461_v56 }
  0x62   :  { %727 = vmatprep.subr.bf16.mxu0 %v1468_v57  ;;  %840 = vmatprep.subr.bf16.mxu1 %v1470_v59 }
  0x63   :  { %552 = vmatmul.mubr.bf16.gmra.mrb[12].mxu0 %v1618_v58  ;;  %665 = vmatmul.mubr.bf16.gmra.mrb[12].mxu1 %v1618_v58 }
  0x64   :  { %561 = vmatprep.mubr.bf16.mxu0 %v1701_v0  ;;  %674 = vmatprep.mubr.bf16.mxu1 %v1701_v0 }
  0x65   :  { %728 = vmatpush1.bf16.msra.mxu0 %v1467_v1  ;;  %841 = vmatpush1.bf16.msra.mxu1 %v1469_v2 }
  0x66   :  { %729 = vmatprep.subr.bf16.mxu0 %v1476_v3  ;;  %842 = vmatprep.subr.bf16.mxu1 %v1478_v4 }
  0x69   :  { %730 = vmatpush1.bf16.msra.mxu0 %v1475_v5  ;;  %843 = vmatpush1.bf16.msra.mxu1 %v1477_v6 }
  0x6b   :  { %562 = vmatmul.mubr.bf16.gmra.mrb[16].mxu0 %v1619_v7  ;;  %675 = vmatmul.mubr.bf16.gmra.mrb[16].mxu1 %v1619_v7 }
  0x6c   :  { %571 = vmatprep.mubr.bf16.mxu0 %v1701_v0  ;;  %684 = vmatprep.mubr.bf16.mxu1 %v1701_v0 }
  0x73   :  { %572 = vmatmul.mubr.bf16.gmra.mrb[20].mxu0 %v1620_v9  ;;  %685 = vmatmul.mubr.bf16.gmra.mrb[20].mxu1 %v1620_v9 }
  0x74   :  { %581 = vmatprep.mubr.bf16.mxu0 %v1701_v0  ;;  %694 = vmatprep.mubr.bf16.mxu1 %v1701_v0 }
  0x7b   :  { %582 = vmatmul.mubr.bf16.gmra.mrb[24].mxu0 %v1621_v10  ;;  %695 = vmatmul.mubr.bf16.gmra.mrb[24].mxu1 %v1621_v10 }
  0x7c   :  { %591 = vmatprep.mubr.bf16.mxu0 %v1701_v0  ;;  %704 = vmatprep.mubr.bf16.mxu1 %v1701_v0 }
  0x83   :  { %592 = vmatmul.mubr.bf16.gmra.mrb[28].mxu0 %v1622_v11  ;;  %705 = vmatmul.mubr.bf16.gmra.mrb[28].mxu1 %v1622_v11 }
  0x84   :  { %747 = vmatprep.mubr.bf16.mxu0 %v1701_v0  ;;  %860 = vmatprep.mubr.bf16.mxu1 %v1701_v0 }
  0x8b   :  { %748 = vmatmul.mubr.bf16.vlgmr.msra.gmra.mrb[32].mxu0 %v1747_v8  ;;  %861 = vmatmul.mubr.bf16.vlgmr.msra.gmra.mrb[32].mxu1 %v1747_v8 }
  0x8c   :  { %757 = vmatprep.mubr.bf16.mxu0 %v1701_v0  ;;  %870 = vmatprep.mubr.bf16.mxu1 %v1701_v0 }
  0x93   :  { %758 = vmatmul.mubr.bf16.gmra.mrb[36].mxu0 %v1753_v25  ;;  %871 = vmatmul.mubr.bf16.gmra.mrb[36].mxu1 %v1753_v25 }
  0x94   :  { %767 = vmatprep.mubr.bf16.mxu0 %v1701_v0  ;;  %880 = vmatprep.mubr.bf16.mxu1 %v1701_v0 }
  0x9b   :  { %768 = vmatmul.mubr.bf16.gmra.mrb[40].mxu0 %v1759_v41  ;;  %881 = vmatmul.mubr.bf16.gmra.mrb[40].mxu1 %v1759_v41 }
  0x9c   :  { %777 = vmatprep.mubr.bf16.mxu0 %v1701_v0  ;;  %890 = vmatprep.mubr.bf16.mxu1 %v1701_v0 }
  0xa3   :  { %778 = vmatmul.mubr.bf16.gmra.mrb[44].mxu0 %v1618_v58  ;;  %891 = vmatmul.mubr.bf16.gmra.mrb[44].mxu1 %v1618_v58 }
  0xa4   :  { %787 = vmatprep.mubr.bf16.mxu0 %v1701_v0  ;;  %900 = vmatprep.mubr.bf16.mxu1 %v1701_v0 }
  0xab   :  { %788 = vmatmul.mubr.bf16.gmra.mrb[48].mxu0 %v1619_v7  ;;  %901 = vmatmul.mubr.bf16.gmra.mrb[48].mxu1 %v1619_v7 }
  0xac   :  { %797 = vmatprep.mubr.bf16.mxu0 %v1701_v0  ;;  %910 = vmatprep.mubr.bf16.mxu1 %v1701_v0 }
  0xb3   :  { %798 = vmatmul.mubr.bf16.gmra.mrb[52].mxu0 %v1620_v9  ;;  %911 = vmatmul.mubr.bf16.gmra.mrb[52].mxu1 %v1620_v9 }
  0xb4   :  { %807 = vmatprep.mubr.bf16.mxu0 %v1701_v0  ;;  %920 = vmatprep.mubr.bf16.mxu1 %v1701_v0 }
  0xbb   :  { %808 = vmatmul.mubr.bf16.gmra.mrb[56].mxu0 %v1621_v10  ;;  %921 = vmatmul.mubr.bf16.gmra.mrb[56].mxu1 %v1621_v10 }
  0xbc   :  { %817 = vmatprep.mubr.bf16.mxu0 %v1701_v0  ;;  %930 = vmatprep.mubr.bf16.mxu1 %v1701_v0 }
  0xc3   :  { %818 = vmatmul.mubr.bf16.gmra.mrb[60].mxu0 %v1622_v11  ;;  %931 = vmatmul.mubr.bf16.gmra.mrb[60].mxu1 %v1622_v11 }
 0x11e   :  { %v523_v8 = vpop.f32.mrb[0].mxu0  ;;  %v636_v12 = vpop.f32.mrb[0].mxu1 }
 0x11f   :  { %v525_v13 = vpop.f32.mrb[1].mxu0  ;;  %v638_v15 = vpop.f32.mrb[1].mxu1 }
 0x120   :  { %v1543_v14 = vpack.c.bf16 %v525_v13, %v523_v8  ;;  %v527_v16 = vpop.f32.mrb[2].mxu0  ;;  %v1544_v17 = vpack.c.bf16 %v638_v15, %v636_v12  ;;  %v640_v18 = vpop.f32.mrb[2].mxu1 }
 0x121   :  { %v529_v19 = vpop.f32.mrb[3].mxu0  ;;  %v642_v21 = vpop.f32.mrb[3].mxu1 }
 0x122   :  { %1325 = vst [vmem:[#allocation7] sm:$0xff] %v1543_v14  ;;  %v1547_v20 = vpack.c.bf16 %v529_v19, %v527_v16  ;;  %1326 = vst [vmem:[#allocation7 + $0x8] sm:$0xff] %v1544_v17  ;;  %v1548_v22 = vpack.c.bf16 %v642_v21, %v640_v18 }
 0x124   :  { %1329 = vst [vmem:[#allocation7 + $0x20] sm:$0xff] %v1547_v20  ;;  %1330 = vst [vmem:[#allocation7 + $0x28] sm:$0xff] %v1548_v22 }
 0x126   :  { %v533_v23 = vpop.f32.mrb[4].mxu0  ;;  %v646_v0 = vpop.f32.mrb[4].mxu1 }
 0x127   :  { %v535_v24 = vpop.f32.mrb[5].mxu0  ;;  %v648_v26 = vpop.f32.mrb[5].mxu1 }
 0x128   :  { %v1551_v25 = vpack.c.bf16 %v535_v24, %v533_v23  ;;  %v537_v27 = vpop.f32.mrb[6].mxu0  ;;  %v1552_v28 = vpack.c.bf16 %v648_v26, %v646_v0  ;;  %v650_v29 = vpop.f32.mrb[6].mxu1 }
 0x129   :  { %v539_v30 = vpop.f32.mrb[7].mxu0  ;;  %v652_v32 = vpop.f32.mrb[7].mxu1 }
 0x12a   :  { %1333 = vst [vmem:[#allocation7 + $0x40] sm:$0xff] %v1551_v25  ;;  %v1555_v31 = vpack.c.bf16 %v539_v30, %v537_v27  ;;  %1334 = vst [vmem:[#allocation7 + $0x48] sm:$0xff] %v1552_v28  ;;  %v1556_v33 = vpack.c.bf16 %v652_v32, %v650_v29 }
 0x12c   :  { %1337 = vst [vmem:[#allocation7 + $0x60] sm:$0xff] %v1555_v31  ;;  %1338 = vst [vmem:[#allocation7 + $0x68] sm:$0xff] %v1556_v33 }
 0x12e   :  { %v543_v34 = vpop.f32.mrb[8].mxu0  ;;  %v656_v35 = vpop.f32.mrb[8].mxu1 }
 0x12f   :  { %v545_v36 = vpop.f32.mrb[9].mxu0  ;;  %v658_v38 = vpop.f32.mrb[9].mxu1 }
 0x130   :  { %v1559_v37 = vpack.c.bf16 %v545_v36, %v543_v34  ;;  %v547_v39 = vpop.f32.mrb[10].mxu0  ;;  %v1560_v40 = vpack.c.bf16 %v658_v38, %v656_v35  ;;  %v660_v41 = vpop.f32.mrb[10].mxu1 }
 0x131   :  { %v549_v42 = vpop.f32.mrb[11].mxu0  ;;  %v662_v44 = vpop.f32.mrb[11].mxu1 }
 0x132   :  { %1341 = vst [vmem:[#allocation7 + $0x80] sm:$0xff] %v1559_v37  ;;  %v1563_v43 = vpack.c.bf16 %v549_v42, %v547_v39  ;;  %1342 = vst [vmem:[#allocation7 + $0x88] sm:$0xff] %v1560_v40  ;;  %v1564_v45 = vpack.c.bf16 %v662_v44, %v660_v41 }
 0x134   :  { %1345 = vst [vmem:[#allocation7 + $0xa0] sm:$0xff] %v1563_v43  ;;  %1346 = vst [vmem:[#allocation7 + $0xa8] sm:$0xff] %v1564_v45 }
 0x136   :  { %v553_v46 = vpop.f32.mrb[12].mxu0  ;;  %v666_v47 = vpop.f32.mrb[12].mxu1 }
 0x137   :  { %v555_v48 = vpop.f32.mrb[13].mxu0  ;;  %v668_v50 = vpop.f32.mrb[13].mxu1 }
 0x138   :  { %v1567_v49 = vpack.c.bf16 %v555_v48, %v553_v46  ;;  %v557_v51 = vpop.f32.mrb[14].mxu0  ;;  %v1568_v52 = vpack.c.bf16 %v668_v50, %v666_v47  ;;  %v670_v53 = vpop.f32.mrb[14].mxu1 }
 0x139   :  { %v559_v54 = vpop.f32.mrb[15].mxu0  ;;  %v672_v56 = vpop.f32.mrb[15].mxu1 }
 0x13a   :  { %1349 = vst [vmem:[#allocation7 + $0xc0] sm:$0xff] %v1567_v49  ;;  %v1571_v55 = vpack.c.bf16 %v559_v54, %v557_v51  ;;  %1350 = vst [vmem:[#allocation7 + $0xc8] sm:$0xff] %v1568_v52  ;;  %v1572_v57 = vpack.c.bf16 %v672_v56, %v670_v53 }
 0x13c   :  { %1353 = vst [vmem:[#allocation7 + $0xe0] sm:$0xff] %v1571_v55  ;;  %1354 = vst [vmem:[#allocation7 + $0xe8] sm:$0xff] %v1572_v57 }
 0x13e   :  { %v563_v58 = vpop.f32.mrb[16].mxu0  ;;  %v676_v59 = vpop.f32.mrb[16].mxu1 }
 0x13f   :  { %v565_v60 = vpop.f32.mrb[17].mxu0  ;;  %v678_v62 = vpop.f32.mrb[17].mxu1 }
 0x140   :  { %v1575_v61 = vpack.c.bf16 %v565_v60, %v563_v58  ;;  %v567_v63 = vpop.f32.mrb[18].mxu0  ;;  %v1576_v1 = vpack.c.bf16 %v678_v62, %v676_v59  ;;  %v680_v2 = vpop.f32.mrb[18].mxu1 }
 0x141   :  { %v569_v3 = vpop.f32.mrb[19].mxu0  ;;  %v682_v5 = vpop.f32.mrb[19].mxu1 }
 0x142   :  { %1357 = vst [vmem:[#allocation7 + $0x100] sm:$0xff] %v1575_v61  ;;  %v1579_v4 = vpack.c.bf16 %v569_v3, %v567_v63  ;;  %1358 = vst [vmem:[#allocation7 + $0x108] sm:$0xff] %v1576_v1  ;;  %v1580_v6 = vpack.c.bf16 %v682_v5, %v680_v2 }
 0x144   :  { %1361 = vst [vmem:[#allocation7 + $0x120] sm:$0xff] %v1579_v4  ;;  %1362 = vst [vmem:[#allocation7 + $0x128] sm:$0xff] %v1580_v6 }
 0x146   :  { %v573_v7 = vpop.f32.mrb[20].mxu0  ;;  %v686_v9 = vpop.f32.mrb[20].mxu1 }
 0x147   :  { %v575_v10 = vpop.f32.mrb[21].mxu0  ;;  %v688_v8 = vpop.f32.mrb[21].mxu1 }
 0x148   :  { %v1583_v11 = vpack.c.bf16 %v575_v10, %v573_v7  ;;  %v577_v12 = vpop.f32.mrb[22].mxu0  ;;  %v1584_v13 = vpack.c.bf16 %v688_v8, %v686_v9  ;;  %v690_v14 = vpop.f32.mrb[22].mxu1 }
 0x149   :  { %v579_v15 = vpop.f32.mrb[23].mxu0  ;;  %v692_v17 = vpop.f32.mrb[23].mxu1 }
 0x14a   :  { %1365 = vst [vmem:[#allocation7 + $0x140] sm:$0xff] %v1583_v11  ;;  %v1587_v16 = vpack.c.bf16 %v579_v15, %v577_v12  ;;  %1366 = vst [vmem:[#allocation7 + $0x148] sm:$0xff] %v1584_v13  ;;  %v1588_v18 = vpack.c.bf16 %v692_v17, %v690_v14 }
 0x14c   :  { %1369 = vst [vmem:[#allocation7 + $0x160] sm:$0xff] %v1587_v16  ;;  %1370 = vst [vmem:[#allocation7 + $0x168] sm:$0xff] %v1588_v18 }
 0x14e   :  { %v583_v19 = vpop.f32.mrb[24].mxu0  ;;  %v696_v20 = vpop.f32.mrb[24].mxu1 }
 0x14f   :  { %v585_v21 = vpop.f32.mrb[25].mxu0  ;;  %v698_v23 = vpop.f32.mrb[25].mxu1 }
 0x150   :  { %v1591_v22 = vpack.c.bf16 %v585_v21, %v583_v19  ;;  %v587_v0 = vpop.f32.mrb[26].mxu0  ;;  %v1592_v24 = vpack.c.bf16 %v698_v23, %v696_v20  ;;  %v700_v25 = vpop.f32.mrb[26].mxu1 }
 0x151   :  { %v589_v26 = vpop.f32.mrb[27].mxu0  ;;  %v702_v28 = vpop.f32.mrb[27].mxu1 }
 0x152   :  { %1373 = vst [vmem:[#allocation7 + $0x180] sm:$0xff] %v1591_v22  ;;  %v1595_v27 = vpack.c.bf16 %v589_v26, %v587_v0  ;;  %1374 = vst [vmem:[#allocation7 + $0x188] sm:$0xff] %v1592_v24  ;;  %v1596_v29 = vpack.c.bf16 %v702_v28, %v700_v25 }
 0x154   :  { %1377 = vst [vmem:[#allocation7 + $0x1a0] sm:$0xff] %v1595_v27  ;;  %1378 = vst [vmem:[#allocation7 + $0x1a8] sm:$0xff] %v1596_v29 }
 0x156   :  { %v593_v30 = vpop.f32.mrb[28].mxu0  ;;  %v706_v31 = vpop.f32.mrb[28].mxu1 }
 0x157   :  { %v595_v32 = vpop.f32.mrb[29].mxu0  ;;  %v708_v34 = vpop.f32.mrb[29].mxu1 }
 0x158   :  { %v1599_v33 = vpack.c.bf16 %v595_v32, %v593_v30  ;;  %v597_v35 = vpop.f32.mrb[30].mxu0  ;;  %v1600_v36 = vpack.c.bf16 %v708_v34, %v706_v31  ;;  %v710_v37 = vpop.f32.mrb[30].mxu1 }
 0x159   :  { %v599_v38 = vpop.f32.mrb[31].mxu0  ;;  %v712_v40 = vpop.f32.mrb[31].mxu1 }
 0x15a   :  { %1381 = vst [vmem:[#allocation7 + $0x1c0] sm:$0xff] %v1599_v33  ;;  %v1603_v39 = vpack.c.bf16 %v599_v38, %v597_v35  ;;  %1382 = vst [vmem:[#allocation7 + $0x1c8] sm:$0xff] %v1600_v36  ;;  %v1604_v41 = vpack.c.bf16 %v712_v40, %v710_v37 }
 0x15c   :  { %1385 = vst [vmem:[#allocation7 + $0x1e0] sm:$0xff] %v1603_v39  ;;  %1386 = vst [vmem:[#allocation7 + $0x1e8] sm:$0xff] %v1604_v41 }
 0x15e   :  { %v749_v42 = vpop.f32.mrb[32].mxu0  ;;  %v862_v43 = vpop.f32.mrb[32].mxu1 }
 0x15f   :  { %v751_v44 = vpop.f32.mrb[33].mxu0  ;;  %v864_v46 = vpop.f32.mrb[33].mxu1 }
 0x160   :  { %v1545_v45 = vpack.c.bf16 %v751_v44, %v749_v42  ;;  %v753_v47 = vpop.f32.mrb[34].mxu0  ;;  %v1546_v48 = vpack.c.bf16 %v864_v46, %v862_v43  ;;  %v866_v49 = vpop.f32.mrb[34].mxu1 }
 0x161   :  { %v755_v50 = vpop.f32.mrb[35].mxu0  ;;  %v868_v52 = vpop.f32.mrb[35].mxu1 }
 0x162   :  { %1327 = vst [vmem:[#allocation7 + $0x10] sm:$0xff] %v1545_v45  ;;  %v1549_v51 = vpack.c.bf16 %v755_v50, %v753_v47  ;;  %1328 = vst [vmem:[#allocation7 + $0x18] sm:$0xff] %v1546_v48  ;;  %v1550_v53 = vpack.c.bf16 %v868_v52, %v866_v49 }
 0x164   :  { %1331 = vst [vmem:[#allocation7 + $0x30] sm:$0xff] %v1549_v51  ;;  %1332 = vst [vmem:[#allocation7 + $0x38] sm:$0xff] %v1550_v53 }
 0x166   :  { %v759_v54 = vpop.f32.mrb[36].mxu0  ;;  %v872_v55 = vpop.f32.mrb[36].mxu1 }
 0x167   :  { %v761_v56 = vpop.f32.mrb[37].mxu0  ;;  %v874_v58 = vpop.f32.mrb[37].mxu1 }
 0x168   :  { %v1553_v57 = vpack.c.bf16 %v761_v56, %v759_v54  ;;  %v763_v59 = vpop.f32.mrb[38].mxu0  ;;  %v1554_v60 = vpack.c.bf16 %v874_v58, %v872_v55  ;;  %v876_v61 = vpop.f32.mrb[38].mxu1 }
 0x169   :  { %v765_v62 = vpop.f32.mrb[39].mxu0  ;;  %v878_v1 = vpop.f32.mrb[39].mxu1 }
 0x16a   :  { %1335 = vst [vmem:[#allocation7 + $0x50] sm:$0xff] %v1553_v57  ;;  %v1557_v63 = vpack.c.bf16 %v765_v62, %v763_v59  ;;  %1336 = vst [vmem:[#allocation7 + $0x58] sm:$0xff] %v1554_v60  ;;  %v1558_v2 = vpack.c.bf16 %v878_v1, %v876_v61 }
 0x16c   :  { %1339 = vst [vmem:[#allocation7 + $0x70] sm:$0xff] %v1557_v63  ;;  %1340 = vst [vmem:[#allocation7 + $0x78] sm:$0xff] %v1558_v2 }
 0x16e   :  { %v769_v3 = vpop.f32.mrb[40].mxu0  ;;  %v882_v4 = vpop.f32.mrb[40].mxu1 }
 0x16f   :  { %v771_v5 = vpop.f32.mrb[41].mxu0  ;;  %v884_v7 = vpop.f32.mrb[41].mxu1 }
 0x170   :  { %v1561_v6 = vpack.c.bf16 %v771_v5, %v769_v3  ;;  %v773_v9 = vpop.f32.mrb[42].mxu0  ;;  %v1562_v10 = vpack.c.bf16 %v884_v7, %v882_v4  ;;  %v886_v11 = vpop.f32.mrb[42].mxu1 }
 0x171   :  { %v775_v8 = vpop.f32.mrb[43].mxu0  ;;  %v888_v13 = vpop.f32.mrb[43].mxu1 }
 0x172   :  { %1343 = vst [vmem:[#allocation7 + $0x90] sm:$0xff] %v1561_v6  ;;  %v1565_v12 = vpack.c.bf16 %v775_v8, %v773_v9  ;;  %1344 = vst [vmem:[#allocation7 + $0x98] sm:$0xff] %v1562_v10  ;;  %v1566_v14 = vpack.c.bf16 %v888_v13, %v886_v11 }
 0x174   :  { %1347 = vst [vmem:[#allocation7 + $0xb0] sm:$0xff] %v1565_v12  ;;  %1348 = vst [vmem:[#allocation7 + $0xb8] sm:$0xff] %v1566_v14 }
 0x176   :  { %v779_v15 = vpop.f32.mrb[44].mxu0  ;;  %v892_v16 = vpop.f32.mrb[44].mxu1 }
 0x177   :  { %v781_v17 = vpop.f32.mrb[45].mxu0  ;;  %v894_v19 = vpop.f32.mrb[45].mxu1 }
 0x178   :  { %v1569_v18 = vpack.c.bf16 %v781_v17, %v779_v15  ;;  %v783_v20 = vpop.f32.mrb[46].mxu0  ;;  %v1570_v21 = vpack.c.bf16 %v894_v19, %v892_v16  ;;  %v896_v22 = vpop.f32.mrb[46].mxu1 }
 0x179   :  { %v785_v23 = vpop.f32.mrb[47].mxu0  ;;  %v898_v24 = vpop.f32.mrb[47].mxu1 }
 0x17a   :  { %1351 = vst [vmem:[#allocation7 + $0xd0] sm:$0xff] %v1569_v18  ;;  %v1573_v0 = vpack.c.bf16 %v785_v23, %v783_v20  ;;  %1352 = vst [vmem:[#allocation7 + $0xd8] sm:$0xff] %v1570_v21  ;;  %v1574_v25 = vpack.c.bf16 %v898_v24, %v896_v22 }
 0x17c   :  { %1355 = vst [vmem:[#allocation7 + $0xf0] sm:$0xff] %v1573_v0  ;;  %1356 = vst [vmem:[#allocation7 + $0xf8] sm:$0xff] %v1574_v25 }
 0x17e   :  { %v789_v26 = vpop.f32.mrb[48].mxu0  ;;  %v902_v27 = vpop.f32.mrb[48].mxu1 }
 0x17f   :  { %v791_v28 = vpop.f32.mrb[49].mxu0  ;;  %v904_v30 = vpop.f32.mrb[49].mxu1 }
 0x180   :  { %v1577_v29 = vpack.c.bf16 %v791_v28, %v789_v26  ;;  %v793_v31 = vpop.f32.mrb[50].mxu0  ;;  %v1578_v32 = vpack.c.bf16 %v904_v30, %v902_v27  ;;  %v906_v33 = vpop.f32.mrb[50].mxu1 }
 0x181   :  { %v795_v34 = vpop.f32.mrb[51].mxu0  ;;  %v908_v36 = vpop.f32.mrb[51].mxu1 }
 0x182   :  { %1359 = vst [vmem:[#allocation7 + $0x110] sm:$0xff] %v1577_v29  ;;  %v1581_v35 = vpack.c.bf16 %v795_v34, %v793_v31  ;;  %1360 = vst [vmem:[#allocation7 + $0x118] sm:$0xff] %v1578_v32  ;;  %v1582_v37 = vpack.c.bf16 %v908_v36, %v906_v33 }
 0x184   :  { %1363 = vst [vmem:[#allocation7 + $0x130] sm:$0xff] %v1581_v35  ;;  %1364 = vst [vmem:[#allocation7 + $0x138] sm:$0xff] %v1582_v37 }
 0x186   :  { %v799_v38 = vpop.f32.mrb[52].mxu0  ;;  %v912_v39 = vpop.f32.mrb[52].mxu1 }
 0x187   :  { %v801_v40 = vpop.f32.mrb[53].mxu0  ;;  %v914_v42 = vpop.f32.mrb[53].mxu1 }
 0x188   :  { %v1585_v41 = vpack.c.bf16 %v801_v40, %v799_v38  ;;  %v803_v43 = vpop.f32.mrb[54].mxu0  ;;  %v1586_v44 = vpack.c.bf16 %v914_v42, %v912_v39  ;;  %v916_v45 = vpop.f32.mrb[54].mxu1 }
 0x189   :  { %v805_v46 = vpop.f32.mrb[55].mxu0  ;;  %v918_v48 = vpop.f32.mrb[55].mxu1 }
 0x18a   :  { %1367 = vst [vmem:[#allocation7 + $0x150] sm:$0xff] %v1585_v41  ;;  %v1589_v47 = vpack.c.bf16 %v805_v46, %v803_v43  ;;  %1368 = vst [vmem:[#allocation7 + $0x158] sm:$0xff] %v1586_v44  ;;  %v1590_v49 = vpack.c.bf16 %v918_v48, %v916_v45 }
 0x18c   :  { %1371 = vst [vmem:[#allocation7 + $0x170] sm:$0xff] %v1589_v47  ;;  %1372 = vst [vmem:[#allocation7 + $0x178] sm:$0xff] %v1590_v49 }
 0x18e   :  { %v809_v50 = vpop.f32.mrb[56].mxu0  ;;  %v922_v51 = vpop.f32.mrb[56].mxu1 }
 0x18f   :  { %v811_v52 = vpop.f32.mrb[57].mxu0  ;;  %v924_v54 = vpop.f32.mrb[57].mxu1 }
 0x190   :  { %v1593_v53 = vpack.c.bf16 %v811_v52, %v809_v50  ;;  %v813_v55 = vpop.f32.mrb[58].mxu0  ;;  %v1594_v56 = vpack.c.bf16 %v924_v54, %v922_v51  ;;  %v926_v57 = vpop.f32.mrb[58].mxu1 }
 0x191   :  { %v815_v58 = vpop.f32.mrb[59].mxu0  ;;  %v928_v60 = vpop.f32.mrb[59].mxu1 }
 0x192   :  { %1375 = vst [vmem:[#allocation7 + $0x190] sm:$0xff] %v1593_v53  ;;  %v1597_v59 = vpack.c.bf16 %v815_v58, %v813_v55  ;;  %1376 = vst [vmem:[#allocation7 + $0x198] sm:$0xff] %v1594_v56  ;;  %v1598_v61 = vpack.c.bf16 %v928_v60, %v926_v57 }
 0x194   :  { %1379 = vst [vmem:[#allocation7 + $0x1b0] sm:$0xff] %v1597_v59  ;;  %1380 = vst [vmem:[#allocation7 + $0x1b8] sm:$0xff] %v1598_v61 }
 0x196   :  { %v819_v62 = vpop.f32.mrb[60].mxu0  ;;  %v932_v63 = vpop.f32.mrb[60].mxu1 }
 0x197   :  { %v821_v1 = vpop.f32.mrb[61].mxu0  ;;  %v934_v3 = vpop.f32.mrb[61].mxu1 }
 0x198   :  { %v1601_v2 = vpack.c.bf16 %v821_v1, %v819_v62  ;;  %v823_v4 = vpop.f32.mrb[62].mxu0  ;;  %v1602_v5 = vpack.c.bf16 %v934_v3, %v932_v63  ;;  %v936_v6 = vpop.f32.mrb[62].mxu1 }
 0x199   :  { %v825_v7 = vpop.f32.mrb[63].mxu0  ;;  %v938_v10 = vpop.f32.mrb[63].mxu1 }
 0x19a   :  { %1383 = vst [vmem:[#allocation7 + $0x1d0] sm:$0xff] %v1601_v2  ;;  %v1605_v9 = vpack.c.bf16 %v825_v7, %v823_v4  ;;  %1384 = vst [vmem:[#allocation7 + $0x1d8] sm:$0xff] %v1602_v5  ;;  %v1606_v11 = vpack.c.bf16 %v938_v10, %v936_v6 }
 0x19c   :  { %1387 = vst [vmem:[#allocation7 + $0x1f0] sm:$0xff] %v1605_v9  ;;  %1388 = vst [vmem:[#allocation7 + $0x1f8] sm:$0xff] %v1606_v11 }
 0x19d   :  { %1678 = shalt.err (!%p1675_p6)
}
 0x19e   :  { %s1679_s12 = scalar_lea.hbm %s1812_s2, 8192 }
 0x19f   :  { %p1680_p7 = scmp.ne.s32.totalorder %s1812_s2, %s1679_s12  ;;  %p1683_p8 = scmp.lt.u32.totalorder %s1679_s12, %s1812_s2 }
 0x1a1   :  { %p1685_p9 = pnand %p1683_p8, %p1680_p7 }
 0x1a3   :  { %1688 = shalt.err (!%p1685_p9)
}
 0x1a4   :  { %1400 = dma.vmem_to_hbm [thread:$0]  %s1395_s8, 8192, %s1812_s2, [#allocation4], %s1699_s0, %s1699_s0, %s1700_s5  }
 0x1a5   :  { %1693 = dma.done.wait [#allocation4], 8192  }
 0x1a6   :  { %1694 = vsyncadd [#allocation4], 4294959104 }
 0x1a7   :  { %1404 = vsyncpa [#allocation3], 1 }
 0x1a8   :  { %1405 = vsyncpa [#allocation6], 1 }
 0x1a9   :  { %1406 = vsyncpa [#allocation4], 1 }

</bundles_post_ra>
